<compile_context>
chip_gen: v5e
topology: v5e:2x2
jax: 0.10.0
libtpu: 0.0.40
codegen_flags: <defaults>
</compile_context>

<pallas_src>
import functools

import jax
import jax.numpy as jnp
from jax.experimental import pallas as pl
from jax.experimental.pallas import tpu as pltpu

_HP = jax.lax.Precision.HIGHEST


def _round_up(x: int, m: int) -> int:
    return ((x + m - 1) // m) * m


# ---------------------------------------------------------------------------
# Kernel: fused one-hot "gather" + 2 MXU matmuls (+ ReLU), biases folded in.
# ---------------------------------------------------------------------------
def make_cnn_lm_kernel(context_width: int, char_vocab: int, l_pad: int):
    ones_lane = context_width * char_vocab       # constant-1 (bias) lane index

    def kernel(tgt_ref, g2_ref, fc2_ref, out_ref):
        tgt = tgt_ref[...]                       # (B, W) int32, tap offsets pre-added
        B = tgt.shape[0]

        # One-hot over W*char_vocab lanes + a constant-1 bias lane, built with
        # iota compares (pure VPU, no dynamic indexing).  Accumulate as bool,
        # cast to f32 once at the end.
        lane = jax.lax.broadcasted_iota(jnp.int32, (B, l_pad), 1)
        acc = lane == ones_lane                  # folded-bias "ones" column
        for t in range(context_width):           # static unroll, W compares
            acc = jnp.logical_or(acc, lane == tgt[:, t:t + 1])
        oh = acc.astype(jnp.float32)             # (B, Lp)

        # embed + conv chain + fc1 (+ its bias) folded into one matmul; the
        # ones lane hits the bias row, and the pass-through column keeps a
        # 1.0 alive after the ReLU for fc2's folded bias row.
        h = jnp.maximum(
            jnp.dot(oh, g2_ref[...], preferred_element_type=jnp.float32), 0.0)

        # fc2 (+ folded bias); lane-dense padded output, single unmasked vst.
        out_ref[...] = jnp.dot(h, fc2_ref[...],
                               preferred_element_type=jnp.float32)

    return kernel


# ---------------------------------------------------------------------------
# Wrapper-side folding of the linear front (embedding + k=2 conv chain)
# ---------------------------------------------------------------------------
def _fold_conv_chain(emb_table, conv_params, context_width, embed_dim):
    """Fold the (linear) conv chain and embedding table into one weight.

    Returns G (W*char_vocab, C) and b_eff (C,) such that
        conv_stack(embed(context)).squeeze(2) == onehot(context) @ G + b_eff
    """
    D = context_width * embed_dim
    M = jnp.eye(D, dtype=jnp.float32)            # flat-embeds -> flat-state
    b = jnp.zeros((D,), jnp.float32)
    T, Cin = context_width, embed_dim

    for (w, bc) in conv_params:                  # w: (Cout, Cin, 2), bc: (Cout,)
        Cout = w.shape[0]
        w0 = jnp.transpose(w[:, :, 0]).astype(jnp.float32)   # (Cin, Cout)
        w1 = jnp.transpose(w[:, :, 1]).astype(jnp.float32)
        M3 = M.reshape(D, T, Cin)
        b2 = b.reshape(T, Cin)
        Mn = (jnp.einsum("dtc,co->dto", M3[:, :-1, :], w0, precision=_HP)
              + jnp.einsum("dtc,co->dto", M3[:, 1:, :], w1, precision=_HP))
        bn = (jnp.dot(b2[:-1], w0, precision=_HP)
              + jnp.dot(b2[1:], w1, precision=_HP)
              + bc[None, :].astype(jnp.float32))
        T -= 1
        Cin = Cout
        M = Mn.reshape(D, T * Cin)
        b = bn.reshape(T * Cin)

    assert T == 1, "conv stack must reduce the temporal length to 1"
    C = M.shape[1]

    # Fold the embedding table: G[t*Vc + v, :] = emb[v] @ M[t*E:(t+1)*E, :]
    Vc = emb_table.shape[0]
    M3 = M.reshape(context_width, embed_dim, C)               # (W, E, C)
    G = jnp.einsum("ve,wec->wvc", emb_table.astype(jnp.float32), M3,
                   precision=_HP)
    return G.reshape(context_width * Vc, C), b


def fold_cnn_lm_params(params, context_width):
    """One-time (per params object) folding into the two augmented matrices."""
    emb_table = params["embedding"]              # (Vc, E)
    conv_params = params["convs"]
    fc1_w, fc1_b = params["fc1"]                 # (H, C), (H,)
    fc2_w, fc2_b = params["fc2"]                 # (V, H), (V,)

    char_vocab, embed_dim = emb_table.shape
    H = fc1_w.shape[0]
    V = fc2_w.shape[0]

    G, b_eff = _fold_conv_chain(emb_table, conv_params, context_width, embed_dim)
    L = G.shape[0]                               # W * char_vocab

    # Fold fc1 (exact: linear composed with linear).
    fc1_wT = jnp.transpose(fc1_w).astype(jnp.float32)          # (C, H)
    G2 = jnp.dot(G, fc1_wT, precision=_HP)                     # (L, H)
    b2 = jnp.dot(b_eff, fc1_wT, precision=_HP) + fc1_b.astype(jnp.float32)

    Lp = _round_up(L + 1, 128)
    Hp = _round_up(H + 1, 128)
    Vp = _round_up(V, 128)

    # Augmented fc1-side matrix: bias row at index L, ReLU pass-through 1 at (L, H).
    g2_aug = jnp.zeros((Lp, Hp), jnp.float32)
    g2_aug = g2_aug.at[:L, :H].set(G2)
    g2_aug = g2_aug.at[L, :H].set(b2)
    g2_aug = g2_aug.at[L, H].set(1.0)

    # Augmented fc2 matrix: bias row at index H.
    fc2_aug = jnp.zeros((Hp, Vp), jnp.float32)
    fc2_aug = fc2_aug.at[:H, :V].set(jnp.transpose(fc2_w).astype(jnp.float32))
    fc2_aug = fc2_aug.at[H, :V].set(fc2_b.astype(jnp.float32))

    folded = {"g2_aug": g2_aug, "fc2_aug": fc2_aug}
    meta = {"context_width": int(context_width),
            "char_vocab": int(char_vocab),
            "vocab_size": int(V)}
    return folded, meta


# ---------------------------------------------------------------------------
# Forward wrapper (jit'ed; folded weights are plain device arrays)
# ---------------------------------------------------------------------------
@functools.partial(jax.jit,
                   static_argnames=("context_width", "char_vocab", "vocab_size"))
def cnn_lm_forward(context, g2_aug, fc2_aug, *,
                   context_width, char_vocab, vocab_size):
    B, W = context.shape
    assert W == context_width
    Lp, _ = g2_aug.shape
    Vp = fc2_aug.shape[1]

    # Per-tap lane offsets, fused into one int add under jit.
    offsets = jnp.arange(W, dtype=jnp.int32) * char_vocab
    tgt = context.astype(jnp.int32) + offsets[None, :]

    vmem = pl.BlockSpec(memory_space=pltpu.MemorySpace.VMEM)
    kernel = make_cnn_lm_kernel(W, char_vocab, Lp)

    out_p = pl.pallas_call(
        kernel,
        out_shape=jax.ShapeDtypeStruct((B, Vp), jnp.float32),
        in_specs=[vmem, vmem, vmem],
        out_specs=vmem,
    )(tgt, g2_aug, fc2_aug)
    return out_p[:, :vocab_size]


# ---------------------------------------------------------------------------
# Pure-JAX reference (mirrors the PyTorch forward) for verification
# ---------------------------------------------------------------------------
def cnn_lm_reference(context, params):
    emb_table = params["embedding"]
    x = jnp.take(emb_table, context, axis=0)          # (B, W, E)
    x = jnp.transpose(x, (0, 2, 1))                   # (B, E, W)
    for (w, b) in params["convs"]:
        L = x.shape[2]
        y = (jnp.einsum("bcl,oc->bol", x[:, :, :L - 1], w[:, :, 0])
             + jnp.einsum("bcl,oc->bol", x[:, :, 1:], w[:, :, 1])
             + b[None, :, None])
        x = y
    x = x[:, :, 0]                                    # squeeze(2)
    fc1_w, fc1_b = params["fc1"]
    fc2_w, fc2_b = params["fc2"]
    h = jax.nn.relu(x @ fc1_w.T + fc1_b)
    return h @ fc2_w.T + fc2_b


# ---------------------------------------------------------------------------
# Deterministic parameter construction
# ---------------------------------------------------------------------------
def init_params(key, char_vocab_size, embed_dim, context_width,
                chan_size, hid_size, vocab_size):
    keys = jax.random.split(key, 3 + 2 * (context_width - 1) + 4)
    ki = iter(keys)

    params = {}
    params["embedding"] = jax.random.normal(
        next(ki), (char_vocab_size, embed_dim), dtype=jnp.float32)

    convs = []
    for i in range(context_width - 1):
        cin = embed_dim if i == 0 else chan_size
        bound = 1.0 / jnp.sqrt(cin * 2.0)
        w = jax.random.uniform(next(ki), (chan_size, cin, 2),
                               minval=-bound, maxval=bound, dtype=jnp.float32)
        b = jax.random.uniform(next(ki), (chan_size,),
                               minval=-bound, maxval=bound, dtype=jnp.float32)
        convs.append((w, b))
    params["convs"] = convs

    b1 = 1.0 / jnp.sqrt(float(chan_size))
    params["fc1"] = (
        jax.random.uniform(next(ki), (hid_size, chan_size),
                           minval=-b1, maxval=b1, dtype=jnp.float32),
        jax.random.uniform(next(ki), (hid_size,),
                           minval=-b1, maxval=b1, dtype=jnp.float32),
    )
    b2 = 1.0 / jnp.sqrt(float(hid_size))
    params["fc2"] = (
        jax.random.uniform(next(ki), (vocab_size, hid_size),
                           minval=-b2, maxval=b2, dtype=jnp.float32),
        jax.random.uniform(next(ki), (vocab_size,),
                           minval=-b2, maxval=b2, dtype=jnp.float32),
    )
    return params


# ---------------------------------------------------------------------------
if __name__ == "__main__":
    CHAR_VOCAB = 16
    EMBED_DIM = 32
    CONTEXT_W = 5       # -> 4 conv layers, final temporal length == 1
    CHAN_SIZE = 32
    HID_SIZE = 32
    VOCAB_SIZE = 64
    BATCH = 8

    root = jax.random.PRNGKey(0)
    pkey, ckey = jax.random.split(root)

    params = init_params(pkey, CHAR_VOCAB, EMBED_DIM, CONTEXT_W,
                         CHAN_SIZE, HID_SIZE, VOCAB_SIZE)
    context = jax.random.randint(ckey, (BATCH, CONTEXT_W), 0, CHAR_VOCAB,
                                 dtype=jnp.int32)

    # One-time weight folding (cache this per params object).
    folded, meta = fold_cnn_lm_params(params, CONTEXT_W)
    folded = jax.tree_util.tree_map(jax.block_until_ready, folded)

    out = jax.block_until_ready(
        cnn_lm_forward(context, folded["g2_aug"], folded["fc2_aug"], **meta))
    ref = jax.block_until_ready(cnn_lm_reference(context, params))

    assert out.shape == (BATCH, VOCAB_SIZE)
    # Tolerance: biases now ride through the (default-precision, bf16-operand)
    # MXU via the ones-column trick, so agreement with the layer-by-layer f32
    # reference is ~1e-3-class rather than ~1e-4-class.
    assert jnp.allclose(out, ref, atol=2e-3, rtol=2e-3), \
        f"max abs err {jnp.max(jnp.abs(out - ref))}"

    print("KERNEL_OK")
</pallas_src>

<mosaic_0001>
module attributes {stable_mosaic.version = 11 : i64} {
  func.func @kernel(%arg0: memref<8x5xi32, #tpu.memory_space<vmem>>, %arg1: memref<128x128xf32, #tpu.memory_space<vmem>>, %arg2: memref<128x128xf32, #tpu.memory_space<vmem>>, %arg3: memref<8x128xf32, #tpu.memory_space<vmem>>) attributes {dimension_semantics = [], scalar_prefetch = 0 : i64, scratch_operands = 0 : i64, tpu.core_type = #tpu.core_type<tc>} {
    %c0 = arith.constant 0 : index
    %c0_0 = arith.constant 0 : index
    %0 = vector.load %arg0[%c0, %c0_0] : memref<8x5xi32, #tpu.memory_space<vmem>>, vector<8x5xi32>
    %1 = tpu.iota {dimensions = array<i32: 1>} : vector<8x128xi32>
    %c80_i32 = arith.constant 80 : i32
    %2 = vector.broadcast %c80_i32 : i32 to vector<8x128xi32>
    %3 = arith.cmpi eq, %1, %2 : vector<8x128xi32>
    %4 = vector.extract_strided_slice %0 {offsets = [0, 0], sizes = [8, 1], strides = [1, 1]} : vector<8x5xi32> to vector<8x1xi32>
    %5 = vector.broadcast %4 : vector<8x1xi32> to vector<8x128xi32>
    %6 = arith.cmpi eq, %1, %5 : vector<8x128xi32>
    %7 = arith.ori %3, %6 : vector<8x128xi1>
    %8 = vector.extract_strided_slice %0 {offsets = [0, 1], sizes = [8, 1], strides = [1, 1]} : vector<8x5xi32> to vector<8x1xi32>
    %9 = vector.broadcast %8 : vector<8x1xi32> to vector<8x128xi32>
    %10 = arith.cmpi eq, %1, %9 : vector<8x128xi32>
    %11 = arith.ori %7, %10 : vector<8x128xi1>
    %12 = vector.extract_strided_slice %0 {offsets = [0, 2], sizes = [8, 1], strides = [1, 1]} : vector<8x5xi32> to vector<8x1xi32>
    %13 = vector.broadcast %12 : vector<8x1xi32> to vector<8x128xi32>
    %14 = arith.cmpi eq, %1, %13 : vector<8x128xi32>
    %15 = arith.ori %11, %14 : vector<8x128xi1>
    %16 = vector.extract_strided_slice %0 {offsets = [0, 3], sizes = [8, 1], strides = [1, 1]} : vector<8x5xi32> to vector<8x1xi32>
    %17 = vector.broadcast %16 : vector<8x1xi32> to vector<8x128xi32>
    %18 = arith.cmpi eq, %1, %17 : vector<8x128xi32>
    %19 = arith.ori %15, %18 : vector<8x128xi1>
    %20 = vector.extract_strided_slice %0 {offsets = [0, 4], sizes = [8, 1], strides = [1, 1]} : vector<8x5xi32> to vector<8x1xi32>
    %21 = vector.broadcast %20 : vector<8x1xi32> to vector<8x128xi32>
    %22 = arith.cmpi eq, %1, %21 : vector<8x128xi32>
    %23 = arith.ori %19, %22 : vector<8x128xi1>
    %24 = arith.extui %23 : vector<8x128xi1> to vector<8x128xi32>
    %25 = arith.sitofp %24 : vector<8x128xi32> to vector<8x128xf32>
    %c0_1 = arith.constant 0 : index
    %c0_2 = arith.constant 0 : index
    %26 = vector.load %arg1[%c0_1, %c0_2] : memref<128x128xf32, #tpu.memory_space<vmem>>, vector<128x128xf32>
    %cst = arith.constant dense<0.000000e+00> : vector<8x128xf32>
    %27 = tpu.matmul %25, %26, %cst {dimension_numbers = #tpu.dot_dimension_numbers<[1], [0], [0], [1], [0, 0, 1, 1], [], []>} : vector<8x128xf32>, vector<128x128xf32>, vector<8x128xf32> -> vector<8x128xf32>
    %cst_3 = arith.constant 0.000000e+00 : f32
    %28 = vector.broadcast %cst_3 : f32 to vector<8x128xf32>
    %29 = arith.maximumf %27, %28 : vector<8x128xf32>
    %c0_4 = arith.constant 0 : index
    %c0_5 = arith.constant 0 : index
    %30 = vector.load %arg2[%c0_4, %c0_5] : memref<128x128xf32, #tpu.memory_space<vmem>>, vector<128x128xf32>
    %cst_6 = arith.constant dense<0.000000e+00> : vector<8x128xf32>
    %31 = tpu.matmul %29, %30, %cst_6 {dimension_numbers = #tpu.dot_dimension_numbers<[1], [0], [0], [1], [0, 0, 1, 1], [], []>} : vector<8x128xf32>, vector<128x128xf32>, vector<8x128xf32> -> vector<8x128xf32>
    %c0_7 = arith.constant 0 : index
    %c0_8 = arith.constant 0 : index
    %32 = vector.load %arg3[%c0_7, %c0_8] : memref<8x128xf32, #tpu.memory_space<vmem>>, vector<8x128xf32>
    tpu.vector_store %arg3[%c0_7, %c0_8], %31 {strides = array<i32>} : memref<8x128xf32, #tpu.memory_space<vmem>>, vector<8x128xf32>,
    return
  }
}

</mosaic_0001>

<bundles_post_ra>
// kernel: cnn_lm_forward.1
= control target key start
LH: loop header
LB: loop body
LE: loop exit
PB: predicated region body
PF: predicated region fallthrough
CT: control target
= control target key end

     0   :  { %8 = vsyncpa [#allocation3], 0  ;;  %s309_s0 = inlined_call_operand.vmem [shape: s32[8,5], index: 0, kind: input, shape index: {}]   ;;  %s310_s1 = inlined_call_operand.hbm [shape: f32[128,128], index: 1, kind: input, shape index: {}]   ;;  %s311_s2 = inlined_call_operand.hbm [shape: f32[128,128], index: 2, kind: input, shape index: {}]   ;;  %s312_s3 = inlined_call_operand.hbm [shape: f32[8,128], index: 3, kind: output, shape index: {}]  }
   0x1   :  { %9 = vsyncpa [#allocation6], 0 }
   0x2   :  { %10 = vsyncpa [#allocation4], 0  ;;  %s17_s14 = sshll.u32 %s310_s1, 4  ;;  %s266_s15 = smov [#allocation2]   ;;  %s18_s14 = int_to_ptr.hbm [resolvable:$true] %s17_s14 }
   0x3   :  { %s19_s16 = sshll.u32 %s266_s15, 4  ;;  %s30_s19 = sshll.u32 %s311_s2, 4  ;;  %s20_s16 = int_to_ptr.vmem [resolvable:$true] %s19_s16  ;;  %s31_s19 = int_to_ptr.hbm [resolvable:$true] %s30_s19 }
   0x4   :  { %s267_s20 = smov 128   ;;  %s268_s21 = smov 8  }
   0x5   :  { %25 = dma.hbm_to_vmem [thread:$0]  %s18_s14, 2048, %s20_s16, [#allocation3], %s267_s20, %s267_s20, %s268_s21  }
   0x6   :  { %s269_s22 = smov [#allocation5]  }
   0x7   :  { %s32_s23 = sshll.u32 %s269_s22, 4  ;;  %s33_s23 = int_to_ptr.vmem [resolvable:$true] %s32_s23 }
   0x8   :  { %38 = dma.hbm_to_vmem [thread:$0]  %s31_s19, 2048, %s33_s23, [#allocation6], %s267_s20, %s267_s20, %s268_s21  }
   0x9   :  { %260 = dma.done.wait [#allocation3], 2048  }
   0xa   :  { %261 = vsyncadd [#allocation3], 4294965248 }
   0xb   :  { %262 = dma.done.wait [#allocation6], 2048  }
   0xc   :  { %263 = vsyncadd [#allocation6], 4294965248  ;;  %v270_v0 = vmov 0   ;;  %v271_v1 = vmov 2   ;;  %v272_v2 = vmov 4   ;;  %v47_v3 = vld [vmem:[%s309_s0] sm:$0xff]  ;;  %v48_v31 = vlaneseq }
   0xd   :  { %182 = vset.pattern.permute.xlu0 %v270_v0  ;;  %184 = vset.pattern.permute.xlu1 %v271_v1  ;;  %v93_v4 = vld [vmem:[#allocation2 + $0x78] sm:$0xff]  ;;  %v92_v5 = vld [vmem:[#allocation2 + $0x70] sm:$0xff]  ;;  %v91_v6 = vld [vmem:[#allocation2 + $0x68] sm:$0xff]  ;;  %v273_v9 = vmov 1   ;;  %v274_v10 = vmov 3   ;;  %v275_v43 = vmov 0.0  }
   0xe   :  { %186 = vset.pattern.permute.xlu2 %v272_v2  ;;  %52 = vperm.xlu0 %182, %v47_v3   ;;  %v90_v7 = vld [vmem:[#allocation2 + $0x60] sm:$0xff]  ;;  %v89_v8 = vld [vmem:[#allocation2 + $0x58] sm:$0xff]  ;;  %v88_v11 = vld [vmem:[#allocation2 + $0x50] sm:$0xff]  ;;  %v49_v36 = vand.u32 127, %v48_v31  ;;  %s276_s0 = smov [#allocation7]   ;;  %s159_s27 = sshll.u32 %s312_s3, 4  ;;  %s160_s27 = int_to_ptr.hbm [resolvable:$true] %s159_s27 }
   0xf   :  { %62 = vperm.xlu1 %184, %v47_v3   ;;  %72 = vperm.xlu2 %186, %v47_v3   ;;  %v87_v12 = vld [vmem:[#allocation2 + $0x48] sm:$0xff]  ;;  %v86_v13 = vld [vmem:[#allocation2 + $0x40] sm:$0xff]  ;;  %v85_v14 = vld [vmem:[#allocation2 + $0x38] sm:$0xff]  ;;  %s157_s24 = sshll.u32 %s276_s0, 4  ;;  %s158_s24 = int_to_ptr.vmem [resolvable:$true] %s157_s24 }
  0x10   :  { %94 = vmatpush.msra.mxu0 %v93_v4  ;;  %v84_v15 = vld [vmem:[#allocation2 + $0x30] sm:$0xff]  ;;  %v83_v16 = vld [vmem:[#allocation2 + $0x28] sm:$0xff]  ;;  %v82_v17 = vld [vmem:[#allocation2 + $0x20] sm:$0xff]  ;;  %vm50_vm0 = vcmp.eq.s32.totalorder %v49_v36, 80 }
  0x11   :  { %v81_v18 = vld [vmem:[#allocation2 + $0x18] sm:$0xff]  ;;  %v80_v19 = vld [vmem:[#allocation2 + $0x10] sm:$0xff]  ;;  %v79_v20 = vld [vmem:[#allocation2 + $0x8] sm:$0xff] }
  0x12   :  { %95 = vmatpush.msra.mxu0 %v92_v5  ;;  %v78_v21 = vld [vmem:[#allocation2] sm:$0xff]  ;;  %v130_v22 = vld [vmem:[#allocation5 + $0x78] sm:$0xff]  ;;  %v129_v23 = vld [vmem:[#allocation5 + $0x70] sm:$0xff] }
  0x13   :  { %131 = vmatpush.msra.mxu1 %v130_v22  ;;  %v128_v24 = vld [vmem:[#allocation5 + $0x68] sm:$0xff]  ;;  %v127_v25 = vld [vmem:[#allocation5 + $0x60] sm:$0xff]  ;;  %v126_v26 = vld [vmem:[#allocation5 + $0x58] sm:$0xff] }
  0x14   :  { %96 = vmatpush.msra.mxu0 %v91_v6  ;;  %v125_v27 = vld [vmem:[#allocation5 + $0x50] sm:$0xff]  ;;  %v124_v28 = vld [vmem:[#allocation5 + $0x48] sm:$0xff]  ;;  %v123_v29 = vld [vmem:[#allocation5 + $0x40] sm:$0xff] }
  0x15   :  { %132 = vmatpush.msra.mxu1 %v129_v23  ;;  %v122_v30 = vld [vmem:[#allocation5 + $0x38] sm:$0xff]  ;;  %v121_v34 = vld [vmem:[#allocation5 + $0x30] sm:$0xff]  ;;  %v120_v35 = vld [vmem:[#allocation5 + $0x28] sm:$0xff] }
  0x16   :  { %97 = vmatpush.msra.mxu0 %v90_v7  ;;  %183 = vset.pattern.permute.xlu0 %v273_v9  ;;  %v119_v37 = vld [vmem:[#allocation5 + $0x20] sm:$0xff]  ;;  %v118_v38 = vld [vmem:[#allocation5 + $0x18] sm:$0xff]  ;;  %v117_v40 = vld [vmem:[#allocation5 + $0x10] sm:$0xff] }
  0x17   :  { %185 = vset.pattern.permute.xlu1 %v274_v10  ;;  %57 = vperm.xlu0 %183, %v47_v3   ;;  %v116_v45 = vld [vmem:[#allocation5 + $0x8] sm:$0xff]  ;;  %v115_v46 = vld [vmem:[#allocation5] sm:$0xff] }
  0x18   :  { %67 = vperm.xlu1 %185, %v47_v3   ;;  %98 = vmatpush.msra.mxu0 %v89_v8 }
  0x19   :  { %133 = vmatpush.msra.mxu1 %v128_v24 }
  0x1a   :  { %99 = vmatpush.msra.mxu0 %v88_v11 }
  0x1b   :  { %134 = vmatpush.msra.mxu1 %v127_v25 }
  0x1c   :  { %100 = vmatpush.msra.mxu0 %v87_v12 }
  0x1d   :  { %135 = vmatpush.msra.mxu1 %v126_v26 }
  0x1e   :  { %101 = vmatpush.msra.mxu0 %v86_v13 }
  0x1f   :  { %187 = vset.pattern.permute.xlu0 %v272_v2  ;;  %136 = vmatpush.msra.mxu1 %v125_v27 }
  0x20   :  { %102 = vmatpush.msra.mxu0 %v85_v14 }
  0x21   :  { %137 = vmatpush.msra.mxu1 %v124_v28 }
  0x22   :  { %103 = vmatpush.msra.mxu0 %v84_v15 }
  0x23   :  { %138 = vmatpush.msra.mxu1 %v123_v29 }
  0x24   :  { %104 = vmatpush.msra.mxu0 %v83_v16 }
  0x25   :  { %139 = vmatpush.msra.mxu1 %v122_v30 }
  0x26   :  { %105 = vmatpush.msra.mxu0 %v82_v17 }
  0x27   :  { %140 = vmatpush.msra.mxu1 %v121_v34 }
  0x28   :  { %106 = vmatpush.msra.mxu0 %v81_v18 }
  0x29   :  { %141 = vmatpush.msra.mxu1 %v120_v35 }
  0x2a   :  { %107 = vmatpush.msra.mxu0 %v80_v19 }
  0x2b   :  { %142 = vmatpush.msra.mxu1 %v119_v37 }
  0x2c   :  { %108 = vmatpush.msra.mxu0 %v79_v20 }
  0x2d   :  { %143 = vmatpush.msra.mxu1 %v118_v38 }
  0x2e   :  { %109 = vmatpush.msra.mxu0 %v78_v21 }
  0x2f   :  { %144 = vmatpush.msra.mxu1 %v117_v40 }
  0x31   :  { %145 = vmatpush.msra.mxu1 %v116_v45 }
  0x33   :  { %146 = vmatpush.msra.mxu1 %v115_v46 }
  0x69   :  { %v73_v39 = vpop.permute.xlu2 %72 }
  0x6a   :  { %vm74_vm7 = vcmp.eq.s32.totalorder %v49_v36, %v73_v39 }
  0x80   :  { %v53_v32 = vpop.permute.xlu0 %52 }
  0x81   :  { %v63_v33 = vpop.permute.xlu1 %62  ;;  %vm54_vm1 = vcmp.eq.s32.totalorder %v49_v36, %v53_v32 }
  0x82   :  { %vm55_vm2 = vmor %vm50_vm0, %vm54_vm1  ;;  %vm64_vm5 = vcmp.eq.s32.totalorder %v49_v36, %v63_v33 }
  0x89   :  { %v58_v41 = vpop.permute.xlu0 %57 }
  0x8a   :  { %v68_v42 = vpop.permute.xlu1 %67  ;;  %vm59_vm3 = vcmp.eq.s32.totalorder %v49_v36, %v58_v41 }
  0x8b   :  { %vm69_vm4 = vcmp.eq.s32.totalorder %v49_v36, %v68_v42  ;;  %vm60_vm6 = vmor %vm55_vm2, %vm59_vm3 }
  0x8c   :  { %vm65_vm8 = vmor %vm60_vm6, %vm64_vm5 }
  0x8d   :  { %vm70_vm9 = vmor %vm65_vm8, %vm69_vm4 }
  0x8e   :  { %vm75_vm10 = vmor %vm70_vm9, %vm74_vm7 }
  0x8f   :  { %v170_v44 = vsel %vm75_vm10, 1.0, %v275_v43 }
  0x90   :  { %110 = vmatmul.f32.vlgmr.msra.gmra.mxu0 %v170_v44 }
 0x10d   :  { %v111_v47 = vpop.f32.mrf.mxu0 }
 0x10e   :  { %v114_v48 = vmax.f32 %v111_v47, 0.0 }
 0x110   :  { %147 = vmatmul.f32.vlgmr.msra.gmra.mxu1 %v114_v48 }
 0x18d   :  { %v148_v49 = vpop.f32.mrf.mxu1 }
 0x18e   :  { %151 = vst [vmem:[#allocation7] sm:$0xff] %v148_v49 }
 0x18f   :  { %162 = dma.vmem_to_hbm [thread:$0]  %s158_s24, 128, %s160_s27, [#allocation4]  }
 0x190   :  { %264 = dma.done.wait [#allocation4], 128  }
 0x191   :  { %265 = vsyncadd [#allocation4], 4294967168 }
 0x192   :  { %167 = vsyncpa [#allocation3], 1 }
 0x193   :  { %168 = vsyncpa [#allocation6], 1 }
 0x194   :  { %169 = vsyncpa [#allocation4], 1 }

</bundles_post_ra>
